<compile_context>
chip_gen: v6e
topology: v6e:2x2x1
jax: 0.10.0
libtpu: 0.0.40
codegen_flags: <defaults>
</compile_context>

<pallas_src>
import functools

import jax
import jax.numpy as jnp
from jax.experimental import pallas as pl
from jax.experimental.pallas import tpu as pltpu


# ----------------------------------------------------------------------------
# Fused MLP kernel
# ----------------------------------------------------------------------------
def _mlp_kernel(x_ref, w1_ref, b1_ref, w2_ref, b2_ref, o_ref):
    """o = GELU(x @ w1 + b1) @ w2 + b2  (exact erf GELU; dropout = identity)."""
    x = x_ref[...]                                                  # (TM, D)
    h = jnp.dot(x, w1_ref[...], preferred_element_type=jnp.float32)
    h = h + b1_ref[...].astype(jnp.float32)                         # f32 accumulate
    # nn.GELU default = exact (erf-based) GELU; keep the elementwise math in f32
    # (v5e VPU/EUP have no bf16 support).
    inv_sqrt2 = jnp.float32(0.7071067811865476)
    h = 0.5 * h * (1.0 + jax.lax.erf(h * inv_sqrt2))
    # Dropout(p=0.0) / eval mode -> identity.
    h = h.astype(w2_ref.dtype)                                      # bf16 operand on bf16 path
    y = jnp.dot(h, w2_ref[...], preferred_element_type=jnp.float32)
    y = y + b2_ref[...].astype(jnp.float32)
    o_ref[...] = y.astype(y.dtype if o_ref.dtype == y.dtype else o_ref.dtype)


def _round_up(x, m):
    return (x + m - 1) // m * m


def _pick_block_m(M, D, Dh, Do, act_bytes, out_bytes, budget_bytes):
    """Largest row tile (multiple of 8, <=1024) whose pipeline fits the VMEM budget."""
    # Per-row live bytes: 2x double-buffered input tile + 2x output tile +
    # f32 hidden intermediate (+ a cast copy for the second matmul operand).
    per_row = 2 * D * act_bytes + 2 * Do * out_bytes + Dh * (4 + act_bytes)
    avail = max(budget_bytes, 2 << 20)
    tm = max(8, min(1024, avail // max(per_row, 1)))
    tm = (tm // 8) * 8
    tm = max(tm, 8)
    return min(tm, _round_up(M, 8))


def mlp_forward(x, w1, b1, w2, b2, *, compute_dtype=None, block_m=None):
    """Mlp forward for x of shape (..., D). Weights stored as (in, out)."""
    orig_dtype = x.dtype
    lead = x.shape[:-1]
    D = x.shape[-1]
    Dh = w1.shape[1]
    Do = w2.shape[1]

    x2 = x.reshape(-1, D)
    M = x2.shape[0]

    if compute_dtype is not None:
        x2 = x2.astype(compute_dtype)
        w1 = w1.astype(compute_dtype)
        w2 = w2.astype(compute_dtype)
    # Biases stay f32; added to the f32 accumulator inside the kernel (free in
    # the dot epilogue on the VPU — do NOT move them to the wrapper).
    b1 = b1.reshape(1, Dh).astype(jnp.float32)
    b2 = b2.reshape(1, Do).astype(jnp.float32)

    act_bytes = jnp.dtype(x2.dtype).itemsize
    out_bytes = jnp.dtype(orig_dtype).itemsize
    w_bytes = jnp.dtype(w1.dtype).itemsize
    weight_bytes = (D * Dh + Dh * Do) * w_bytes + (Dh + Do) * 4

    # Total on-chip budget: conservative 48 MiB so it fits v7x's 64 MiB/TC with
    # headroom (and is well under v5e/v6e's 128 MiB).
    total_budget = 48 << 20
    act_budget = total_budget - weight_bytes
    if block_m is None:
        tm = _pick_block_m(M, D, Dh, Do, act_bytes, out_bytes, act_budget)
    else:
        tm = min(block_m, _round_up(M, 8))
        tm = max(8, (tm // 8) * 8)

    m_pad = _round_up(M, tm)
    if m_pad != M:
        x2 = jnp.pad(x2, ((0, m_pad - M), (0, 0)))

    grid = (m_pad // tm,)

    # Scoped-VMEM limit: cover weights + pipeline with ~25% slack; clamp to the
    # smallest physical VMEM across generations (v7x: 64 MiB/TC). Never below
    # the 32 MiB most generations default to.
    per_row = 2 * D * act_bytes + 2 * Do * out_bytes + Dh * (4 + act_bytes)
    est_vmem = weight_bytes + tm * per_row
    vmem_limit = int(min(max(int(est_vmem * 1.25) + (2 << 20), 32 << 20), 64 << 20))

    cost = pl.CostEstimate(
        flops=2 * M * (D * Dh + Dh * Do),
        transcendentals=M * Dh,
        bytes_accessed=(M * D) * act_bytes
        + (M * Do) * out_bytes
        + (D * Dh + Dh * Do) * w_bytes
        + (Dh + Do) * 4,
    )

    out = pl.pallas_call(
        _mlp_kernel,
        out_shape=jax.ShapeDtypeStruct((m_pad, Do), orig_dtype),
        grid_spec=pltpu.PrefetchScalarGridSpec(
            num_scalar_prefetch=0,
            grid=grid,
            in_specs=[
                pl.BlockSpec((tm, D), lambda i: (i, 0)),    # activation tile (pipelined)
                pl.BlockSpec((D, Dh), lambda i: (0, 0)),    # fc1 weight, VMEM-resident
                pl.BlockSpec((1, Dh), lambda i: (0, 0)),    # fc1 bias
                pl.BlockSpec((Dh, Do), lambda i: (0, 0)),   # fc2 weight, VMEM-resident
                pl.BlockSpec((1, Do), lambda i: (0, 0)),    # fc2 bias
            ],
            out_specs=pl.BlockSpec((tm, Do), lambda i: (i, 0)),
        ),
        compiler_params=pltpu.CompilerParams(
            dimension_semantics=("parallel",),  # shard row tiles across v7x's 2 TCs
            vmem_limit_bytes=vmem_limit,
        ),
        cost_estimate=cost,
    )(x2, w1, b1, w2, b2)

    if m_pad != M:
        out = out[:M]
    return out.reshape(*lead, Do)


# ----------------------------------------------------------------------------
# Module-like wrapper (parameters stored as (in, out) so no transpose at call time)
# ----------------------------------------------------------------------------
class MlpPallas:
    def __init__(self, key, in_features, hidden_features=None, out_features=None,
                 drop=0.0, dtype=jnp.float32):
        out_features = out_features or in_features
        hidden_features = hidden_features or in_features
        assert drop == 0.0  # TODO(synk): training-mode dropout not implemented (eval-mode identity)
        k = jax.random.split(key, 4)
        self.fc1_w = jax.random.normal(k[0], (in_features, hidden_features), dtype) * 0.02
        self.fc1_b = jax.random.normal(k[1], (hidden_features,), dtype) * 0.02
        self.fc2_w = jax.random.normal(k[2], (hidden_features, out_features), dtype) * 0.02
        self.fc2_b = jax.random.normal(k[3], (out_features,), dtype) * 0.02

    def __call__(self, x, *, compute_dtype=None):
        return mlp_forward(x, self.fc1_w, self.fc1_b, self.fc2_w, self.fc2_b,
                           compute_dtype=compute_dtype)


# ----------------------------------------------------------------------------
# Plain-JAX reference
# ----------------------------------------------------------------------------
def mlp_reference(x, w1, b1, w2, b2):
    h = x @ w1 + b1
    h = 0.5 * h * (1.0 + jax.lax.erf(h * 0.7071067811865476))
    return h @ w2 + b2


if __name__ == "__main__":
    key = jax.random.PRNGKey(0)
    k_x, k_model = jax.random.split(key)

    # Small shapes consistent with the module: tokens (batch=2, seq=8, features=32),
    # hidden=512, out=512.
    in_features, hidden_features, out_features = 32, 512, 512
    x = jax.random.normal(k_x, (2, 8, in_features), jnp.float32)

    model = MlpPallas(k_model, in_features, hidden_features, out_features)

    # f32 path (bit-faithful to the PyTorch module's numerics).
    fwd_f32 = jax.jit(functools.partial(model.__call__, compute_dtype=None))
    out = jax.block_until_ready(fwd_f32(x))

    ref = mlp_reference(x, model.fc1_w, model.fc1_b, model.fc2_w, model.fc2_b)
    assert out.shape == (2, 8, out_features), out.shape
    assert jnp.allclose(out, ref, atol=1e-4, rtol=1e-4), "f32 mismatch vs reference"

    # bf16-operand / f32-accumulate path (MXU throughput on v6e/v7x).
    fwd_bf16 = jax.jit(functools.partial(model.__call__, compute_dtype=jnp.bfloat16))
    out_bf16 = jax.block_until_ready(fwd_bf16(x))
    assert out_bf16.shape == (2, 8, out_features)
    assert jnp.allclose(out_bf16, ref, atol=5e-2, rtol=5e-2), "bf16 path diverged"

    print("KERNEL_OK")
</pallas_src>

<mosaic_0001>
module attributes {stable_mosaic.version = 11 : i64} {
  func.func @_mlp_kernel(%arg0: i32, %arg1: memref<16x32xf32, #tpu.memory_space<vmem>>, %arg2: memref<32x512xf32, #tpu.memory_space<vmem>>, %arg3: memref<1x512xf32, #tpu.memory_space<vmem>>, %arg4: memref<512x512xf32, #tpu.memory_space<vmem>>, %arg5: memref<1x512xf32, #tpu.memory_space<vmem>>, %arg6: memref<16x512xf32, #tpu.memory_space<vmem>>) attributes {dimension_semantics = [#tpu.dimension_semantics<parallel>], iteration_bounds = array<i64: 1>, scalar_prefetch = 0 : i64, scratch_operands = 0 : i64, tpu.core_type = #tpu.core_type<tc>, window_params = [{transform_indices = @transform_0, window_bounds = array<i64: 16, 32>}, {pipeline_mode = #tpu.pipeline_mode<synchronous>, transform_indices = @transform_1, window_bounds = array<i64: 32, 512>}, {pipeline_mode = #tpu.pipeline_mode<synchronous>, transform_indices = @transform_2, window_bounds = array<i64: 1, 512>}, {pipeline_mode = #tpu.pipeline_mode<synchronous>, transform_indices = @transform_3, window_bounds = array<i64: 512, 512>}, {pipeline_mode = #tpu.pipeline_mode<synchronous>, transform_indices = @transform_4, window_bounds = array<i64: 1, 512>}, {transform_indices = @transform_5, window_bounds = array<i64: 16, 512>}]} {
    %c0 = arith.constant 0 : index
    %c0_0 = arith.constant 0 : index
    %0 = vector.load %arg1[%c0, %c0_0] : memref<16x32xf32, #tpu.memory_space<vmem>>, vector<16x32xf32>
    %c0_1 = arith.constant 0 : index
    %c0_2 = arith.constant 0 : index
    %1 = vector.load %arg2[%c0_1, %c0_2] : memref<32x512xf32, #tpu.memory_space<vmem>>, vector<32x512xf32>
    %cst = arith.constant dense<0.000000e+00> : vector<16x512xf32>
    %2 = tpu.matmul %0, %1, %cst {dimension_numbers = #tpu.dot_dimension_numbers<[1], [0], [0], [1], [0, 0, 1, 1], [], []>} : vector<16x32xf32>, vector<32x512xf32>, vector<16x512xf32> -> vector<16x512xf32>
    %c0_3 = arith.constant 0 : index
    %c0_4 = arith.constant 0 : index
    %3 = vector.load %arg3[%c0_3, %c0_4] : memref<1x512xf32, #tpu.memory_space<vmem>>, vector<1x512xf32>
    %4 = vector.broadcast %3 : vector<1x512xf32> to vector<16x512xf32>
    %5 = arith.addf %2, %4 : vector<16x512xf32>
    %cst_5 = arith.constant 5.000000e-01 : f32
    %6 = vector.broadcast %cst_5 : f32 to vector<16x512xf32>
    %7 = arith.mulf %6, %5 : vector<16x512xf32>
    %cst_6 = arith.constant 0.707106769 : f32
    %8 = vector.broadcast %cst_6 : f32 to vector<16x512xf32>
    %9 = arith.mulf %5, %8 : vector<16x512xf32>
    %10 = math.erf %9 : vector<16x512xf32>
    %cst_7 = arith.constant 1.000000e+00 : f32
    %11 = vector.broadcast %cst_7 : f32 to vector<16x512xf32>
    %12 = arith.addf %11, %10 : vector<16x512xf32>
    %13 = arith.mulf %7, %12 : vector<16x512xf32>
    %c0_8 = arith.constant 0 : index
    %c0_9 = arith.constant 0 : index
    %14 = vector.load %arg4[%c0_8, %c0_9] : memref<512x512xf32, #tpu.memory_space<vmem>>, vector<512x512xf32>
    %cst_10 = arith.constant dense<0.000000e+00> : vector<16x512xf32>
    %15 = tpu.matmul %13, %14, %cst_10 {dimension_numbers = #tpu.dot_dimension_numbers<[1], [0], [0], [1], [0, 0, 1, 1], [], []>} : vector<16x512xf32>, vector<512x512xf32>, vector<16x512xf32> -> vector<16x512xf32>
    %c0_11 = arith.constant 0 : index
    %c0_12 = arith.constant 0 : index
    %16 = vector.load %arg5[%c0_11, %c0_12] : memref<1x512xf32, #tpu.memory_space<vmem>>, vector<1x512xf32>
    %17 = vector.broadcast %16 : vector<1x512xf32> to vector<16x512xf32>
    %18 = arith.addf %15, %17 : vector<16x512xf32>
    %c0_13 = arith.constant 0 : index
    %c0_14 = arith.constant 0 : index
    %19 = vector.load %arg6[%c0_13, %c0_14] : memref<16x512xf32, #tpu.memory_space<vmem>>, vector<16x512xf32>
    tpu.vector_store %arg6[%c0_13, %c0_14], %18 {strides = array<i32>} : memref<16x512xf32, #tpu.memory_space<vmem>>, vector<16x512xf32>,
    return
  }
  func.func @transform_0(%arg0: i32) -> (i32, i32) {
    %c0_i32 = arith.constant 0 : i32
    %c0_i32_0 = arith.constant 0 : i32
    return %arg0, %c0_i32 : i32, i32
  }
  func.func @transform_1(%arg0: i32) -> (i32, i32) {
    %c0_i32 = arith.constant 0 : i32
    %c0_i32_0 = arith.constant 0 : i32
    %c0_i32_1 = arith.constant 0 : i32
    return %c0_i32, %c0_i32_0 : i32, i32
  }
  func.func @transform_2(%arg0: i32) -> (i32, i32) {
    %c0_i32 = arith.constant 0 : i32
    %c0_i32_0 = arith.constant 0 : i32
    %c0_i32_1 = arith.constant 0 : i32
    return %c0_i32, %c0_i32_0 : i32, i32
  }
  func.func @transform_3(%arg0: i32) -> (i32, i32) {
    %c0_i32 = arith.constant 0 : i32
    %c0_i32_0 = arith.constant 0 : i32
    %c0_i32_1 = arith.constant 0 : i32
    return %c0_i32, %c0_i32_0 : i32, i32
  }
  func.func @transform_4(%arg0: i32) -> (i32, i32) {
    %c0_i32 = arith.constant 0 : i32
    %c0_i32_0 = arith.constant 0 : i32
    %c0_i32_1 = arith.constant 0 : i32
    return %c0_i32, %c0_i32_0 : i32, i32
  }
  func.func @transform_5(%arg0: i32) -> (i32, i32) {
    %c0_i32 = arith.constant 0 : i32
    %c0_i32_0 = arith.constant 0 : i32
    return %arg0, %c0_i32 : i32, i32
  }
}

</mosaic_0001>

<bundles_post_ra>
// kernel: a_call__.1
= control target key start
LH: loop header
LB: loop body
LE: loop exit
PB: predicated region body
PF: predicated region fallthrough
CT: control target
= control target key end

     0   :  { %10 = vsyncpa [#allocation3], 0  ;;  %s1183_s0 = inlined_call_operand.hbm [shape: f32[16,32], index: 0, kind: input, shape index: {}]   ;;  %s1184_s1 = inlined_call_operand.hbm [shape: f32[32,512], index: 1, kind: input, shape index: {}]   ;;  %s1185_s2 = inlined_call_operand.vmem [shape: f32[1,512], index: 2, kind: input, shape index: {}]   ;;  %s1186_s3 = inlined_call_operand.hbm [shape: f32[512,512], index: 3, kind: input, shape index: {}]   ;;  %s1187_s4 = inlined_call_operand.hbm [shape: f32[1,512], index: 4, kind: input, shape index: {}]   ;;  %s1188_s5 = inlined_call_operand.hbm [shape: f32[16,512], index: 5, kind: output, shape index: {}]  }
   0x1   :  { %11 = vsyncpa [#allocation6], 0 }
   0x2   :  { %12 = vsyncpa [#allocation9], 0 }
   0x3   :  { %13 = vsyncpa [#allocation4], 0  ;;  %s1066_s18 = smov [#allocation5]  }
   0x4   :  { %s31_s19 = sshll.u32 %s1066_s18, 4  ;;  %s32_s19 = int_to_ptr.vmem [resolvable:$true] %s31_s19 }
   0x5   :  { %s966_s20 = scalar_lea.vmem %s32_s19, 2048  ;;  %p971_p1 = scmp.lt.s32.totalorder %s32_s19, %s32_s19 }
   0x6   :  { %p967_p0 = scmp.ne.s32.totalorder %s32_s19, %s966_s20  ;;  %p972_p2 = scmp.lt.s32.totalorder %s966_s20, %s966_s20 }
   0x8   :  { %p973_p3 = por %p972_p2, %p971_p1 }
   0xa   :  { %p974_p4 = pnand %p973_p3, %p967_p0 }
   0xc   :  { %977 = shalt.err (!%p974_p4)
}
   0xd   :  { %s1067_s21 = smov 512   ;;  %s1068_s22 = smov 32  }
   0xe   :  { %37 = dma.hbm_to_vmem [thread:$0]  %s1184_s1, 2048, %s32_s19, [#allocation6], %s1067_s21, %s1067_s21, %s1068_s22  }
   0xf   :  { %s1069_s25 = smov [#allocation2]  }
  0x10   :  { %s19_s26 = sshll.u32 %s1069_s25, 4  ;;  %s20_s26 = int_to_ptr.vmem [resolvable:$true] %s19_s26 }
  0x11   :  { %s986_s27 = scalar_lea.vmem %s20_s26, 256  ;;  %p991_p6 = scmp.lt.s32.totalorder %s20_s26, %s20_s26 }
  0x12   :  { %p987_p5 = scmp.ne.s32.totalorder %s20_s26, %s986_s27  ;;  %p992_p7 = scmp.lt.s32.totalorder %s986_s27, %s986_s27 }
  0x14   :  { %p993_p8 = por %p992_p7, %p991_p6 }
  0x16   :  { %p994_p9 = pnand %p993_p8, %p987_p5 }
  0x18   :  { %997 = shalt.err (!%p994_p9)
}
  0x19   :  { %s1070_s28 = smov 128   ;;  %s1071_s29 = smov 8  }
  0x1a   :  { %25 = dma.hbm_to_vmem [thread:$0]  %s1183_s0, 256, %s20_s26, [#allocation3], %s1070_s28, %s1070_s28, %s1071_s29  }
  0x1b   :  { %s1072_s7 = smov [#allocation7]   ;;  %s1073_s9 = smov [#allocation8]  }
  0x1c   :  { %s45_s8 = sshll.u32 %s1072_s7, 4  ;;  %s58_s1 = sshll.u32 %s1073_s9, 4  ;;  %s46_s8 = int_to_ptr.vmem [resolvable:$true] %s45_s8  ;;  %s59_s1 = int_to_ptr.vmem [resolvable:$true] %s58_s1 }
  0x1d   :  { %s1006_s10 = scalar_lea.vmem %s46_s8, 32768  ;;  %p1011_p11 = scmp.lt.s32.totalorder %s46_s8, %s46_s8 }
  0x1e   :  { %p1007_p10 = scmp.ne.s32.totalorder %s46_s8, %s1006_s10  ;;  %p1012_p12 = scmp.lt.s32.totalorder %s1006_s10, %s1006_s10 }
  0x20   :  { %p1013_p13 = por %p1012_p12, %p1011_p11 }
  0x22   :  { %p1014_p0 = pnand %p1013_p13, %p1007_p10 }
  0x24   :  { %1017 = shalt.err (!%p1014_p0)
}
  0x25   :  { %51 = dma.hbm_to_vmem [thread:$0]  %s1186_s3, 32768, %s46_s8, [#allocation6], %s1067_s21, %s1067_s21, %s1068_s22  }
  0x26   :  { %s1026_s0 = scalar_lea.vmem %s59_s1, 64  ;;  %p1031_p2 = scmp.lt.s32.totalorder %s59_s1, %s59_s1 }
  0x27   :  { %p1027_p1 = scmp.ne.s32.totalorder %s59_s1, %s1026_s0  ;;  %p1032_p3 = scmp.lt.s32.totalorder %s1026_s0, %s1026_s0 }
  0x29   :  { %p1033_p4 = por %p1032_p3, %p1031_p2 }
  0x2b   :  { %p1034_p5 = pnand %p1033_p4, %p1027_p1 }
  0x2d   :  { %1037 = shalt.err (!%p1034_p5)
}
  0x2e   :  { %61 = dma.hbm_to_vmem [thread:$0]  %s1187_s4, 64, %s59_s1, [#allocation9]  }
  0x2f   :  { %1058 = dma.done.wait [#allocation3], 256  }
  0x30   :  { %1059 = vsyncadd [#allocation3], 4294967040 }
  0x31   :  { %1060 = dma.done.wait [#allocation6], 34816  }
  0x32   :  { %1061 = vsyncadd [#allocation6], 4294932480 }
  0x33   :  { %1062 = dma.done.wait [#allocation9], 64  }
  0x34   :  { %1063 = vsyncadd [#allocation9], 4294967232  ;;  %v1074_v0 = vmov 0.0   ;;  %v89_v1 = vld [vmem:[#allocation5 + $0x68] sm:$0xff]  ;;  %v91_v2 = vld [vmem:[#allocation5 + $0x78] sm:$0xff]  ;;  %vm114_vm0 = vcmask 261120  }
  0x35   :  { %185 = vmatprep.mubr.f32.mxu0 %v1074_v0  ;;  %262 = vmatprep.mubr.f32.mxu1 %v1074_v0  ;;  %v88_v3 = vld [vmem:[#allocation5 + $0x60] sm:$0xff]  ;;  %v90_v4 = vld [vmem:[#allocation5 + $0x70] sm:$0xff]  ;;  %v85_v5 = vld [vmem:[#allocation5 + $0x48] sm:$0xff] }
  0x36   :  { %145 = vmatprep.subr.mxu0 %v89_v1  ;;  %222 = vmatprep.subr.mxu1 %v91_v2  ;;  %v87_v6 = vld [vmem:[#allocation5 + $0x58] sm:$0xff]  ;;  %v84_v7 = vld [vmem:[#allocation5 + $0x40] sm:$0xff]  ;;  %v86_v8 = vld [vmem:[#allocation5 + $0x50] sm:$0xff] }
  0x37   :  { %146 = vmatpush1.msra.mxu0 %v88_v3  ;;  %223 = vmatpush1.msra.mxu1 %v90_v4  ;;  %v81_v9 = vld [vmem:[#allocation5 + $0x28] sm:$0xff]  ;;  %v83_v10 = vld [vmem:[#allocation5 + $0x38] sm:$0xff]  ;;  %v80_v11 = vld [vmem:[#allocation5 + $0x20] sm:$0xff] }
  0x38   :  { %147 = vmatprep.subr.mxu0 %v85_v5  ;;  %224 = vmatprep.subr.mxu1 %v87_v6  ;;  %v82_v12 = vld [vmem:[#allocation5 + $0x30] sm:$0xff]  ;;  %v77_v13 = vld [vmem:[#allocation5 + $0x8] sm:$0xff]  ;;  %v79_v14 = vld [vmem:[#allocation5 + $0x18] sm:$0xff] }
  0x39   :  { %148 = vmatpush1.msra.mxu0 %v84_v7  ;;  %225 = vmatpush1.msra.mxu1 %v86_v8  ;;  %v76_v15 = vld [vmem:[#allocation5] sm:$0xff]  ;;  %v78_v16 = vld [vmem:[#allocation5 + $0x10] sm:$0xff]  ;;  %v376_v18 = vld [vmem:[#allocation7 + $0x1e8] sm:$0xff] }
  0x3a   :  { %149 = vmatprep.subr.mxu0 %v81_v9  ;;  %226 = vmatprep.subr.mxu1 %v83_v10  ;;  %v74_v17 = vld [vmem:[#allocation2] sm:$0xff]  ;;  %v504_v19 = vld [vmem:[#allocation7 + $0x5e8] sm:$0xff]  ;;  %v375_v20 = vld [vmem:[#allocation7 + $0x1e0] sm:$0xff] }
  0x3b   :  { %150 = vmatpush1.msra.mxu0 %v80_v11  ;;  %227 = vmatpush1.msra.mxu1 %v82_v12  ;;  %v503_v21 = vld [vmem:[#allocation7 + $0x5e0] sm:$0xff]  ;;  %v75_v22 = vld [vmem:[#allocation2 + $0x8] sm:$0xff]  ;;  %v372_v23 = vld [vmem:[#allocation7 + $0x1c8] sm:$0xff] }
  0x3c   :  { %151 = vmatprep.subr.mxu0 %v77_v13  ;;  %228 = vmatprep.subr.mxu1 %v79_v14  ;;  %v500_v24 = vld [vmem:[#allocation7 + $0x5c8] sm:$0xff]  ;;  %v371_v25 = vld [vmem:[#allocation7 + $0x1c0] sm:$0xff] }
  0x3d   :  { %152 = vmatpush1.msra.mxu0 %v76_v15  ;;  %229 = vmatpush1.msra.mxu1 %v78_v16  ;;  %v499_v26 = vld [vmem:[#allocation7 + $0x5c0] sm:$0xff]  ;;  %v368_v27 = vld [vmem:[#allocation7 + $0x1a8] sm:$0xff] }
  0x3e   :  { %928 = vmatmul.mubr.msk.f32.vlgmr.msra.gmra.mxu0 %vm114_vm0, %v74_v17  ;;  %930 = vmatmul.mubr.msk.f32.vlgmr.msra.gmra.mxu1 %vm114_vm0, %v74_v17  ;;  %v496_v28 = vld [vmem:[#allocation7 + $0x5a8] sm:$0xff]  ;;  %v367_v29 = vld [vmem:[#allocation7 + $0x1a0] sm:$0xff] }
  0x3f   :  { %191 = vmatprep.mubr.f32.mxu0 %v1074_v0  ;;  %268 = vmatprep.mubr.f32.mxu1 %v1074_v0  ;;  %v495_v30 = vld [vmem:[#allocation7 + $0x5a0] sm:$0xff]  ;;  %v364_v31 = vld [vmem:[#allocation7 + $0x188] sm:$0xff] }
  0x40   :  { %593 = vmatprep.subr.mxu0 %v376_v18  ;;  %670 = vmatprep.subr.mxu1 %v504_v19  ;;  %v492_v32 = vld [vmem:[#allocation7 + $0x588] sm:$0xff]  ;;  %v363_v33 = vld [vmem:[#allocation7 + $0x180] sm:$0xff] }
  0x41   :  { %594 = vmatpush1.msra.mxu0 %v375_v20  ;;  %671 = vmatpush1.msra.mxu1 %v503_v21  ;;  %v491_v34 = vld [vmem:[#allocation7 + $0x580] sm:$0xff]  ;;  %v360_v35 = vld [vmem:[#allocation7 + $0x168] sm:$0xff] }
  0x42   :  { %929 = vmatmul.mubr.msk.f32.gmra.mxu0 %vm114_vm0, %v75_v22  ;;  %931 = vmatmul.mubr.msk.f32.gmra.mxu1 %vm114_vm0, %v75_v22  ;;  %v488_v36 = vld [vmem:[#allocation7 + $0x568] sm:$0xff]  ;;  %v359_v37 = vld [vmem:[#allocation7 + $0x160] sm:$0xff] }
  0x43   :  { %595 = vmatprep.subr.mxu0 %v372_v23  ;;  %672 = vmatprep.subr.mxu1 %v500_v24  ;;  %v487_v38 = vld [vmem:[#allocation7 + $0x560] sm:$0xff]  ;;  %v356_v39 = vld [vmem:[#allocation7 + $0x148] sm:$0xff] }
  0x44   :  { %596 = vmatpush1.msra.mxu0 %v371_v25  ;;  %673 = vmatpush1.msra.mxu1 %v499_v26  ;;  %v484_v40 = vld [vmem:[#allocation7 + $0x548] sm:$0xff]  ;;  %v355_v41 = vld [vmem:[#allocation7 + $0x140] sm:$0xff] }
  0x45   :  { %597 = vmatprep.subr.mxu0 %v368_v27  ;;  %674 = vmatprep.subr.mxu1 %v496_v28  ;;  %v483_v42 = vld [vmem:[#allocation7 + $0x540] sm:$0xff]  ;;  %v352_v43 = vld [vmem:[#allocation7 + $0x128] sm:$0xff] }
  0x46   :  { %598 = vmatpush1.msra.mxu0 %v367_v29  ;;  %675 = vmatpush1.msra.mxu1 %v495_v30  ;;  %v480_v44 = vld [vmem:[#allocation7 + $0x528] sm:$0xff]  ;;  %v351_v45 = vld [vmem:[#allocation7 + $0x120] sm:$0xff] }
  0x47   :  { %599 = vmatprep.subr.mxu0 %v364_v31  ;;  %676 = vmatprep.subr.mxu1 %v492_v32  ;;  %v479_v46 = vld [vmem:[#allocation7 + $0x520] sm:$0xff]  ;;  %v348_v47 = vld [vmem:[#allocation7 + $0x108] sm:$0xff] }
  0x48   :  { %600 = vmatpush1.msra.mxu0 %v363_v33  ;;  %677 = vmatpush1.msra.mxu1 %v491_v34  ;;  %v476_v48 = vld [vmem:[#allocation7 + $0x508] sm:$0xff]  ;;  %v347_v49 = vld [vmem:[#allocation7 + $0x100] sm:$0xff] }
  0x49   :  { %601 = vmatprep.subr.mxu0 %v360_v35  ;;  %678 = vmatprep.subr.mxu1 %v488_v36  ;;  %v475_v50 = vld [vmem:[#allocation7 + $0x500] sm:$0xff]  ;;  %v344_v51 = vld [vmem:[#allocation7 + $0xe8] sm:$0xff] }
  0x4a   :  { %602 = vmatpush1.msra.mxu0 %v359_v37  ;;  %679 = vmatpush1.msra.mxu1 %v487_v38  ;;  %v472_v52 = vld [vmem:[#allocation7 + $0x4e8] sm:$0xff]  ;;  %v343_v53 = vld [vmem:[#allocation7 + $0xe0] sm:$0xff] }
  0x4b   :  { %603 = vmatprep.subr.mxu0 %v356_v39  ;;  %680 = vmatprep.subr.mxu1 %v484_v40  ;;  %v471_v54 = vld [vmem:[#allocation7 + $0x4e0] sm:$0xff]  ;;  %v340_v55 = vld [vmem:[#allocation7 + $0xc8] sm:$0xff] }
  0x4c   :  { %604 = vmatpush1.msra.mxu0 %v355_v41  ;;  %681 = vmatpush1.msra.mxu1 %v483_v42  ;;  %v468_v56 = vld [vmem:[#allocation7 + $0x4c8] sm:$0xff]  ;;  %v339_v57 = vld [vmem:[#allocation7 + $0xc0] sm:$0xff] }
  0x4d   :  { %605 = vmatprep.subr.mxu0 %v352_v43  ;;  %682 = vmatprep.subr.mxu1 %v480_v44  ;;  %v467_v58 = vld [vmem:[#allocation7 + $0x4c0] sm:$0xff]  ;;  %v336_v59 = vld [vmem:[#allocation7 + $0xa8] sm:$0xff] }
  0x4e   :  { %606 = vmatpush1.msra.mxu0 %v351_v45  ;;  %683 = vmatpush1.msra.mxu1 %v479_v46  ;;  %v464_v60 = vld [vmem:[#allocation7 + $0x4a8] sm:$0xff]  ;;  %v335_v61 = vld [vmem:[#allocation7 + $0xa0] sm:$0xff] }
  0x4f   :  { %607 = vmatprep.subr.mxu0 %v348_v47  ;;  %684 = vmatprep.subr.mxu1 %v476_v48  ;;  %v463_v62 = vld [vmem:[#allocation7 + $0x4a0] sm:$0xff]  ;;  %v332_v63 = vld [vmem:[#allocation7 + $0x88] sm:$0xff] }
  0x50   :  { %608 = vmatpush1.msra.mxu0 %v347_v49  ;;  %685 = vmatpush1.msra.mxu1 %v475_v50  ;;  %v460_v0 = vld [vmem:[#allocation7 + $0x488] sm:$0xff]  ;;  %v331_v1 = vld [vmem:[#allocation7 + $0x80] sm:$0xff] }
  0x51   :  { %609 = vmatprep.subr.mxu0 %v344_v51  ;;  %686 = vmatprep.subr.mxu1 %v472_v52  ;;  %v459_v2 = vld [vmem:[#allocation7 + $0x480] sm:$0xff]  ;;  %v328_v3 = vld [vmem:[#allocation7 + $0x68] sm:$0xff] }
  0x52   :  { %610 = vmatpush1.msra.mxu0 %v343_v53  ;;  %687 = vmatpush1.msra.mxu1 %v471_v54  ;;  %v456_v4 = vld [vmem:[#allocation7 + $0x468] sm:$0xff]  ;;  %v327_v5 = vld [vmem:[#allocation7 + $0x60] sm:$0xff] }
  0x53   :  { %611 = vmatprep.subr.mxu0 %v340_v55  ;;  %688 = vmatprep.subr.mxu1 %v468_v56  ;;  %v455_v6 = vld [vmem:[#allocation7 + $0x460] sm:$0xff]  ;;  %v324_v7 = vld [vmem:[#allocation7 + $0x48] sm:$0xff] }
  0x54   :  { %612 = vmatpush1.msra.mxu0 %v339_v57  ;;  %689 = vmatpush1.msra.mxu1 %v467_v58  ;;  %v452_v8 = vld [vmem:[#allocation7 + $0x448] sm:$0xff]  ;;  %v323_v9 = vld [vmem:[#allocation7 + $0x40] sm:$0xff] }
  0x55   :  { %613 = vmatprep.subr.mxu0 %v336_v59  ;;  %690 = vmatprep.subr.mxu1 %v464_v60  ;;  %v451_v10 = vld [vmem:[#allocation7 + $0x440] sm:$0xff]  ;;  %v320_v11 = vld [vmem:[#allocation7 + $0x28] sm:$0xff] }
  0x56   :  { %614 = vmatpush1.msra.mxu0 %v335_v61  ;;  %691 = vmatpush1.msra.mxu1 %v463_v62  ;;  %v448_v12 = vld [vmem:[#allocation7 + $0x428] sm:$0xff]  ;;  %v319_v13 = vld [vmem:[#allocation7 + $0x20] sm:$0xff] }
  0x57   :  { %615 = vmatprep.subr.mxu0 %v332_v63  ;;  %692 = vmatprep.subr.mxu1 %v460_v0  ;;  %v447_v14 = vld [vmem:[#allocation7 + $0x420] sm:$0xff]  ;;  %v316_v15 = vld [vmem:[#allocation7 + $0x8] sm:$0xff] }
  0x58   :  { %616 = vmatpush1.msra.mxu0 %v331_v1  ;;  %693 = vmatpush1.msra.mxu1 %v459_v2  ;;  %v444_v16 = vld [vmem:[#allocation7 + $0x408] sm:$0xff]  ;;  %v315_v17 = vld [vmem:[#allocation7] sm:$0xff] }
  0x59   :  { %617 = vmatprep.subr.mxu0 %v328_v3  ;;  %694 = vmatprep.subr.mxu1 %v456_v4  ;;  %v443_v18 = vld [vmem:[#allocation7 + $0x400] sm:$0xff]  ;;  %v440_v19 = vld [vmem:[#allocation7 + $0x3e8] sm:$0xff] }
  0x5a   :  { %618 = vmatpush1.msra.mxu0 %v327_v5  ;;  %695 = vmatpush1.msra.mxu1 %v455_v6  ;;  %v568_v20 = vld [vmem:[#allocation7 + $0x7e8] sm:$0xff]  ;;  %v439_v21 = vld [vmem:[#allocation7 + $0x3e0] sm:$0xff] }
  0x5b   :  { %619 = vmatprep.subr.mxu0 %v324_v7  ;;  %696 = vmatprep.subr.mxu1 %v452_v8  ;;  %v567_v22 = vld [vmem:[#allocation7 + $0x7e0] sm:$0xff]  ;;  %v436_v23 = vld [vmem:[#allocation7 + $0x3c8] sm:$0xff] }
  0x5c   :  { %620 = vmatpush1.msra.mxu0 %v323_v9  ;;  %697 = vmatpush1.msra.mxu1 %v451_v10  ;;  %v564_v24 = vld [vmem:[#allocation7 + $0x7c8] sm:$0xff]  ;;  %v435_v25 = vld [vmem:[#allocation7 + $0x3c0] sm:$0xff] }
  0x5d   :  { %621 = vmatprep.subr.mxu0 %v320_v11  ;;  %698 = vmatprep.subr.mxu1 %v448_v12  ;;  %v563_v26 = vld [vmem:[#allocation7 + $0x7c0] sm:$0xff]  ;;  %v432_v27 = vld [vmem:[#allocation7 + $0x3a8] sm:$0xff] }
  0x5e   :  { %622 = vmatpush1.msra.mxu0 %v319_v13  ;;  %699 = vmatpush1.msra.mxu1 %v447_v14  ;;  %v560_v28 = vld [vmem:[#allocation7 + $0x7a8] sm:$0xff]  ;;  %v431_v29 = vld [vmem:[#allocation7 + $0x3a0] sm:$0xff] }
  0x5f   :  { %623 = vmatprep.subr.mxu0 %v316_v15  ;;  %700 = vmatprep.subr.mxu1 %v444_v16  ;;  %v559_v30 = vld [vmem:[#allocation7 + $0x7a0] sm:$0xff]  ;;  %v428_v31 = vld [vmem:[#allocation7 + $0x388] sm:$0xff] }
  0x60   :  { %624 = vmatpush1.msra.mxu0 %v315_v17  ;;  %701 = vmatpush1.msra.mxu1 %v443_v18  ;;  %v556_v32 = vld [vmem:[#allocation7 + $0x788] sm:$0xff]  ;;  %v427_v33 = vld [vmem:[#allocation7 + $0x380] sm:$0xff] }
  0x61   :  { %625 = vmatprep.subr.mxu0 %v440_v19  ;;  %702 = vmatprep.subr.mxu1 %v568_v20  ;;  %v555_v34 = vld [vmem:[#allocation7 + $0x780] sm:$0xff]  ;;  %v424_v35 = vld [vmem:[#allocation7 + $0x368] sm:$0xff]  ;;  %v378_v19 = vld [vmem:[#allocation7 + $0x1f8] sm:$0xff] }
  0x62   :  { %626 = vmatpush2.msra.mxu0 %v439_v21  ;;  %703 = vmatpush2.msra.mxu1 %v567_v22  ;;  %v552_v36 = vld [vmem:[#allocation7 + $0x768] sm:$0xff]  ;;  %v423_v37 = vld [vmem:[#allocation7 + $0x360] sm:$0xff]  ;;  %v506_v20 = vld [vmem:[#allocation7 + $0x5f8] sm:$0xff]  ;;  %v94_v21 = vlaneseq }
  0x63   :  { %627 = vmatprep.subr.mxu0 %v436_v23  ;;  %704 = vmatprep.subr.mxu1 %v564_v24  ;;  %v551_v38 = vld [vmem:[#allocation7 + $0x760] sm:$0xff]  ;;  %v420_v39 = vld [vmem:[#allocation7 + $0x348] sm:$0xff] }
  0x64   :  { %628 = vmatpush2.msra.mxu0 %v435_v25  ;;  %705 = vmatpush2.msra.mxu1 %v563_v26  ;;  %v548_v40 = vld [vmem:[#allocation7 + $0x748] sm:$0xff]  ;;  %v419_v41 = vld [vmem:[#allocation7 + $0x340] sm:$0xff]  ;;  %v1128_v22 = vshrl.u32 %v94_v21, 7  ;;  %v92_v25 = vld [vmem:[%s1185_s2] sm:$0xf]  ;;  %s1075_s2 = smov [#allocation10]  }
  0x65   :  { %629 = vmatprep.subr.mxu0 %v432_v27  ;;  %706 = vmatprep.subr.mxu1 %v560_v28  ;;  %v547_v42 = vld [vmem:[#allocation7 + $0x740] sm:$0xff]  ;;  %v416_v43 = vld [vmem:[#allocation7 + $0x328] sm:$0xff]  ;;  %s914_s15 = sshll.u32 %s1075_s2, 4  ;;  %s915_s15 = int_to_ptr.vmem [resolvable:$true] %s914_s15 }
  0x66   :  { %630 = vmatpush2.msra.mxu0 %v431_v29  ;;  %707 = vmatpush2.msra.mxu1 %v559_v30  ;;  %v544_v44 = vld [vmem:[#allocation7 + $0x728] sm:$0xff]  ;;  %v415_v45 = vld [vmem:[#allocation7 + $0x320] sm:$0xff]  ;;  %v96_v23 = vsub.s32 0, %v1128_v22  ;;  %v104_v24 = vsub.s32 2, %v1128_v22  ;;  %v100_v26 = vsub.s32 1, %v1128_v22  ;;  %v108_v27 = vsub.s32 3, %v1128_v22  ;;  %p1043_p7 = scmp.lt.s32.totalorder %s915_s15, %s915_s15 }
  0x67   :  { %631 = vmatprep.subr.mxu0 %v428_v31  ;;  %708 = vmatprep.subr.mxu1 %v556_v32  ;;  %v543_v46 = vld [vmem:[#allocation7 + $0x720] sm:$0xff]  ;;  %v412_v47 = vld [vmem:[#allocation7 + $0x308] sm:$0xff]  ;;  %s1038_s16 = scalar_lea.vmem %s915_s15, 1024 }
  0x68   :  { %632 = vmatpush2.msra.mxu0 %v427_v33  ;;  %709 = vmatpush2.msra.mxu1 %v555_v34  ;;  %v540_v48 = vld [vmem:[#allocation7 + $0x708] sm:$0xff]  ;;  %v411_v49 = vld [vmem:[#allocation7 + $0x300] sm:$0xff]  ;;  %v97_v28 = vrot.slane %v92_v25, %v96_v23  ;;  %v105_v29 = vrot.slane %v92_v25, %v104_v24  ;;  %v101_v32 = vrot.slane %v92_v25, %v100_v26  ;;  %p1039_p6 = scmp.ne.s32.totalorder %s915_s15, %s1038_s16  ;;  %p1044_p8 = scmp.lt.s32.totalorder %s1038_s16, %s1038_s16 }
  0x69   :  { %633 = vmatprep.subr.mxu0 %v424_v35  ;;  %710 = vmatprep.subr.mxu1 %v552_v36  ;;  %v539_v50 = vld [vmem:[#allocation7 + $0x700] sm:$0xff]  ;;  %v408_v51 = vld [vmem:[#allocation7 + $0x2e8] sm:$0xff]  ;;  %v109_v33 = vrot.slane %v92_v25, %v108_v27  ;;  %v502_v25 = vld [vmem:[#allocation7 + $0x5d8] sm:$0xff] }
  0x6a   :  { %634 = vmatpush2.msra.mxu0 %v423_v37  ;;  %711 = vmatpush2.msra.mxu1 %v551_v38  ;;  %v536_v52 = vld [vmem:[#allocation7 + $0x6e8] sm:$0xff]  ;;  %v407_v53 = vld [vmem:[#allocation7 + $0x2e0] sm:$0xff]  ;;  %p1045_p9 = por %p1044_p8, %p1043_p7 }
  0x6b   :  { %635 = vmatprep.subr.mxu0 %v420_v39  ;;  %712 = vmatprep.subr.mxu1 %v548_v40  ;;  %v535_v54 = vld [vmem:[#allocation7 + $0x6e0] sm:$0xff]  ;;  %v404_v55 = vld [vmem:[#allocation7 + $0x2c8] sm:$0xff] }
  0x6c   :  { %636 = vmatpush2.msra.mxu0 %v419_v41  ;;  %713 = vmatpush2.msra.mxu1 %v547_v42  ;;  %v532_v56 = vld [vmem:[#allocation7 + $0x6c8] sm:$0xff]  ;;  %v403_v57 = vld [vmem:[#allocation7 + $0x2c0] sm:$0xff]  ;;  %p1046_p10 = pnand %p1045_p9, %p1039_p6 }
  0x6d   :  { %637 = vmatprep.subr.mxu0 %v416_v43  ;;  %714 = vmatprep.subr.mxu1 %v544_v44  ;;  %v531_v58 = vld [vmem:[#allocation7 + $0x6c0] sm:$0xff]  ;;  %v400_v59 = vld [vmem:[#allocation7 + $0x2a8] sm:$0xff] }
  0x6e   :  { %638 = vmatpush2.msra.mxu0 %v415_v45  ;;  %715 = vmatpush2.msra.mxu1 %v543_v46  ;;  %v528_v60 = vld [vmem:[#allocation7 + $0x6a8] sm:$0xff]  ;;  %v399_v61 = vld [vmem:[#allocation7 + $0x2a0] sm:$0xff] }
  0x6f   :  { %639 = vmatprep.subr.mxu0 %v412_v47  ;;  %716 = vmatprep.subr.mxu1 %v540_v48  ;;  %v527_v62 = vld [vmem:[#allocation7 + $0x6a0] sm:$0xff]  ;;  %v396_v63 = vld [vmem:[#allocation7 + $0x288] sm:$0xff] }
  0x70   :  { %640 = vmatpush2.msra.mxu0 %v411_v49  ;;  %717 = vmatpush2.msra.mxu1 %v539_v50  ;;  %v524_v0 = vld [vmem:[#allocation7 + $0x688] sm:$0xff]  ;;  %v395_v1 = vld [vmem:[#allocation7 + $0x280] sm:$0xff] }
  0x71   :  { %641 = vmatprep.subr.mxu0 %v408_v51  ;;  %718 = vmatprep.subr.mxu1 %v536_v52  ;;  %v523_v2 = vld [vmem:[#allocation7 + $0x680] sm:$0xff]  ;;  %v392_v3 = vld [vmem:[#allocation7 + $0x268] sm:$0xff] }
  0x72   :  { %642 = vmatpush2.msra.mxu0 %v407_v53  ;;  %719 = vmatpush2.msra.mxu1 %v535_v54  ;;  %v520_v4 = vld [vmem:[#allocation7 + $0x668] sm:$0xff]  ;;  %v391_v5 = vld [vmem:[#allocation7 + $0x260] sm:$0xff] }
  0x73   :  { %643 = vmatprep.subr.mxu0 %v404_v55  ;;  %720 = vmatprep.subr.mxu1 %v532_v56  ;;  %v519_v6 = vld [vmem:[#allocation7 + $0x660] sm:$0xff]  ;;  %v388_v7 = vld [vmem:[#allocation7 + $0x248] sm:$0xff] }
  0x74   :  { %644 = vmatpush2.msra.mxu0 %v403_v57  ;;  %721 = vmatpush2.msra.mxu1 %v531_v58  ;;  %v516_v8 = vld [vmem:[#allocation7 + $0x648] sm:$0xff]  ;;  %v387_v9 = vld [vmem:[#allocation7 + $0x240] sm:$0xff] }
  0x75   :  { %645 = vmatprep.subr.mxu0 %v400_v59  ;;  %722 = vmatprep.subr.mxu1 %v528_v60  ;;  %v515_v10 = vld [vmem:[#allocation7 + $0x640] sm:$0xff]  ;;  %v384_v11 = vld [vmem:[#allocation7 + $0x228] sm:$0xff] }
  0x76   :  { %646 = vmatpush2.msra.mxu0 %v399_v61  ;;  %723 = vmatpush2.msra.mxu1 %v527_v62  ;;  %v512_v12 = vld [vmem:[#allocation7 + $0x628] sm:$0xff]  ;;  %v383_v13 = vld [vmem:[#allocation7 + $0x220] sm:$0xff] }
  0x77   :  { %647 = vmatprep.subr.mxu0 %v396_v63  ;;  %724 = vmatprep.subr.mxu1 %v524_v0  ;;  %v511_v14 = vld [vmem:[#allocation7 + $0x620] sm:$0xff]  ;;  %v380_v15 = vld [vmem:[#allocation7 + $0x208] sm:$0xff] }
  0x78   :  { %648 = vmatpush2.msra.mxu0 %v395_v1  ;;  %725 = vmatpush2.msra.mxu1 %v523_v2  ;;  %v508_v16 = vld [vmem:[#allocation7 + $0x608] sm:$0xff]  ;;  %v379_v17 = vld [vmem:[#allocation7 + $0x200] sm:$0xff] }
  0x79   :  { %649 = vmatprep.subr.mxu0 %v392_v3  ;;  %726 = vmatprep.subr.mxu1 %v520_v4  ;;  %v507_v18 = vld [vmem:[#allocation7 + $0x600] sm:$0xff] }
  0x7a   :  { %650 = vmatpush2.msra.mxu0 %v391_v5  ;;  %727 = vmatpush2.msra.mxu1 %v519_v6 }
  0x7b   :  { %651 = vmatprep.subr.mxu0 %v388_v7  ;;  %728 = vmatprep.subr.mxu1 %v516_v8 }
  0x7c   :  { %652 = vmatpush2.msra.mxu0 %v387_v9  ;;  %729 = vmatpush2.msra.mxu1 %v515_v10 }
  0x7d   :  { %653 = vmatprep.subr.mxu0 %v384_v11  ;;  %730 = vmatprep.subr.mxu1 %v512_v12 }
  0x7e   :  { %654 = vmatpush2.msra.mxu0 %v383_v13  ;;  %731 = vmatpush2.msra.mxu1 %v511_v14  ;;  %v377_v13 = vld [vmem:[#allocation7 + $0x1f0] sm:$0xff] }
  0x7f   :  { %655 = vmatprep.subr.mxu0 %v380_v15  ;;  %732 = vmatprep.subr.mxu1 %v508_v16 }
  0x80   :  { %656 = vmatpush2.msra.mxu0 %v379_v17  ;;  %733 = vmatpush2.msra.mxu1 %v507_v18  ;;  %v505_v18 = vld [vmem:[#allocation7 + $0x5f0] sm:$0xff] }
  0x81   :  { %747 = vmatprep.subr.mxu0 %v378_v19  ;;  %824 = vmatprep.subr.mxu1 %v506_v20  ;;  %v374_v19 = vld [vmem:[#allocation7 + $0x1d8] sm:$0xff] }
  0xfe   :  { %v187_v30 = vpop.f32.mrf.mxu0  ;;  %v264_v31 = vpop.f32.mrf.mxu1 }
  0xff   :  { %v188_v34 = vadd.f32 %v187_v30, %v97_v28  ;;  %v265_v35 = vadd.f32 %v264_v31, %v105_v29  ;;  %v501_v30 = vld [vmem:[#allocation7 + $0x5d0] sm:$0xff] }
 0x100   :  { %v189_v36 = vpop.f32.mrf.mxu0  ;;  %v266_v37 = vpop.f32.mrf.mxu1 }
 0x101   :  { %v283_v38 = vmul.f32 0.70710677, %v188_v34  ;;  %v285_v39 = vmul.f32 0.70710677, %v265_v35  ;;  %v190_v40 = vadd.f32 %v189_v36, %v101_v32  ;;  %v267_v41 = vadd.f32 %v266_v37, %v109_v33  ;;  %v369_v37 = vld [vmem:[#allocation7 + $0x1b0] sm:$0xff] }
 0x102   :  { %v193_v42 = vpop.f32.mrf.mxu0  ;;  %v270_v43 = vpop.f32.mrf.mxu1  ;;  %v275_v1 = vmul.f32 0.5, %v188_v34  ;;  %v277_v5 = vmul.f32 0.5, %v265_v35  ;;  %v498_v35 = vld [vmem:[#allocation7 + $0x5b8] sm:$0xff] }
 0x103   :  { %942 = verf.f32 %v283_v38  ;;  %v194_v44 = vadd.f32 %v193_v42, %v97_v28  ;;  %v271_v45 = vadd.f32 %v270_v43, %v105_v29  ;;  %v284_v46 = vmul.f32 0.70710677, %v190_v40  ;;  %v373_v28 = vld [vmem:[#allocation7 + $0x1d0] sm:$0xff]  ;;  %v362_v43 = vld [vmem:[#allocation7 + $0x178] sm:$0xff] }
 0x104   :  { %944 = verf.f32 %v285_v39  ;;  %v195_v47 = vpop.f32.mrf.mxu0  ;;  %v272_v48 = vpop.f32.mrf.mxu1  ;;  %v286_v49 = vmul.f32 0.70710677, %v267_v41  ;;  %v276_v62 = vmul.f32 0.5, %v190_v40  ;;  %v278_v2 = vmul.f32 0.5, %v267_v41  ;;  %v497_v38 = vld [vmem:[#allocation7 + $0x5b0] sm:$0xff]  ;;  %v366_v39 = vld [vmem:[#allocation7 + $0x198] sm:$0xff] }
 0x105   :  { %v287_v50 = vmul.f32 0.70710677, %v194_v44  ;;  %946 = verf.f32 %v284_v46  ;;  %v289_v51 = vmul.f32 0.70710677, %v271_v45  ;;  %v196_v52 = vadd.f32 %v195_v47, %v101_v32  ;;  %v494_v40 = vld [vmem:[#allocation7 + $0x598] sm:$0xff]  ;;  %v365_v41 = vld [vmem:[#allocation7 + $0x190] sm:$0xff] }
 0x106   :  { %v273_v53 = vadd.f32 %v272_v48, %v109_v33  ;;  %948 = verf.f32 %v286_v49  ;;  %v279_v6 = vmul.f32 0.5, %v194_v44  ;;  %v281_v17 = vmul.f32 0.5, %v271_v45  ;;  %v370_v33 = vld [vmem:[#allocation7 + $0x1b8] sm:$0xff]  ;;  %v493_v42 = vld [vmem:[#allocation7 + $0x590] sm:$0xff] }
 0x107   :  { %950 = verf.f32 %v287_v50  ;;  %v288_v54 = vmul.f32 0.70710677, %v196_v52  ;;  %v280_v7 = vmul.f32 0.5, %v196_v52  ;;  %v490_v44 = vld [vmem:[#allocation7 + $0x578] sm:$0xff]  ;;  %v361_v45 = vld [vmem:[#allocation7 + $0x170] sm:$0xff] }
 0x108   :  { %952 = verf.f32 %v289_v51  ;;  %v290_v55 = vmul.f32 0.70710677, %v273_v53  ;;  %v282_v11 = vmul.f32 0.5, %v273_v53  ;;  %v489_v46 = vld [vmem:[#allocation7 + $0x570] sm:$0xff]  ;;  %v358_v47 = vld [vmem:[#allocation7 + $0x158] sm:$0xff] }
 0x109   :  { %954 = verf.f32 %v288_v54  ;;  %v486_v48 = vld [vmem:[#allocation7 + $0x558] sm:$0xff]  ;;  %v357_v49 = vld [vmem:[#allocation7 + $0x150] sm:$0xff] }
 0x10a   :  { %956 = verf.f32 %v290_v55  ;;  %v485_v50 = vld [vmem:[#allocation7 + $0x550] sm:$0xff]  ;;  %v354_v51 = vld [vmem:[#allocation7 + $0x138] sm:$0xff] }
 0x10b   :  { %v482_v52 = vld [vmem:[#allocation7 + $0x538] sm:$0xff]  ;;  %v353_v53 = vld [vmem:[#allocation7 + $0x130] sm:$0xff] }
 0x10c   :  { %v481_v54 = vld [vmem:[#allocation7 + $0x530] sm:$0xff]  ;;  %v350_v55 = vld [vmem:[#allocation7 + $0x118] sm:$0xff] }
 0x110   :  { %v943_v56 = vpop.eup %942 }
 0x111   :  { %v945_v57 = vpop.eup %944  ;;  %v299_v59 = vadd.f32 1.0, %v943_v56  ;;  %v478_v56 = vld [vmem:[#allocation7 + $0x518] sm:$0xff] }
 0x112   :  { %v947_v58 = vpop.eup %946  ;;  %v301_v61 = vadd.f32 1.0, %v945_v57  ;;  %v349_v57 = vld [vmem:[#allocation7 + $0x110] sm:$0xff] }
 0x113   :  { %v949_v60 = vpop.eup %948  ;;  %v300_v63 = vadd.f32 1.0, %v947_v58  ;;  %v1145_v10 = vmul.f32 %v299_v59, %v275_v1  ;;  %v477_v58 = vld [vmem:[#allocation7 + $0x510] sm:$0xff]  ;;  %v346_v59 = vld [vmem:[#allocation7 + $0xf8] sm:$0xff] }
 0x114   :  { %v951_v0 = vpop.eup %950  ;;  %v302_v3 = vadd.f32 1.0, %v949_v60  ;;  %v1147_v16 = vmul.f32 %v301_v61, %v277_v5  ;;  %v474_v60 = vld [vmem:[#allocation7 + $0x4f8] sm:$0xff]  ;;  %v345_v61 = vld [vmem:[#allocation7 + $0xf0] sm:$0xff] }
 0x115   :  { %v953_v4 = vpop.eup %952  ;;  %v308_v8 = vmul.f32 %v300_v63, %v276_v62  ;;  %v303_v14 = vadd.f32 1.0, %v951_v0  ;;  %v473_v62 = vld [vmem:[#allocation7 + $0x4f0] sm:$0xff]  ;;  %v342_v63 = vld [vmem:[#allocation7 + $0xd8] sm:$0xff] }
 0x116   :  { %v955_v9 = vpop.eup %954  ;;  %v310_v12 = vmul.f32 %v302_v3, %v278_v2  ;;  %v305_v21 = vadd.f32 1.0, %v953_v4  ;;  %v470_v0 = vld [vmem:[#allocation7 + $0x4d8] sm:$0xff]  ;;  %v341_v1 = vld [vmem:[#allocation7 + $0xd0] sm:$0xff] }
 0x117   :  { %v957_v15 = vpop.eup %956  ;;  %657 = vmatprep.mubr.f32.mxu0 %v308_v8  ;;  %v304_v20 = vadd.f32 1.0, %v955_v9  ;;  %v1155_v34 = vmul.f32 %v303_v14, %v279_v6  ;;  %v469_v2 = vld [vmem:[#allocation7 + $0x4d0] sm:$0xff]  ;;  %v338_v3 = vld [vmem:[#allocation7 + $0xb8] sm:$0xff] }
 0x118   :  { %734 = vmatprep.mubr.f32.mxu1 %v310_v12  ;;  %658 = vmatmul.mubr.f32.vlgmr.msra.gmra.mxu0 %v1145_v10  ;;  %v306_v29 = vadd.f32 1.0, %v957_v15  ;;  %v1157_v36 = vmul.f32 %v305_v21, %v281_v17  ;;  %v466_v4 = vld [vmem:[#allocation7 + $0x4b8] sm:$0xff]  ;;  %v337_v5 = vld [vmem:[#allocation7 + $0xb0] sm:$0xff] }
 0x119   :  { %735 = vmatmul.mubr.f32.vlgmr.msra.gmra.mxu1 %v1147_v16  ;;  %748 = vmatpush1.msra.mxu0 %v377_v13  ;;  %v1151_v31 = vmul.f32 %v304_v20, %v280_v7  ;;  %v465_v6 = vld [vmem:[#allocation7 + $0x4b0] sm:$0xff]  ;;  %v334_v7 = vld [vmem:[#allocation7 + $0x98] sm:$0xff] }
 0x11a   :  { %825 = vmatpush1.msra.mxu1 %v505_v18  ;;  %749 = vmatprep.subr.mxu0 %v374_v19  ;;  %v1153_v32 = vmul.f32 %v306_v29, %v282_v11  ;;  %v333_v9 = vld [vmem:[#allocation7 + $0x90] sm:$0xff]  ;;  %v458_v13 = vld [vmem:[#allocation7 + $0x478] sm:$0xff] }
 0x11b   :  { %826 = vmatprep.subr.mxu1 %v502_v25  ;;  %750 = vmatpush1.msra.mxu0 %v373_v28  ;;  %v461_v11 = vld [vmem:[#allocation7 + $0x490] sm:$0xff]  ;;  %v326_v17 = vld [vmem:[#allocation7 + $0x58] sm:$0xff] }
 0x11c   :  { %827 = vmatpush1.msra.mxu1 %v501_v30  ;;  %663 = vmatprep.mubr.f32.mxu0 %v1151_v31  ;;  %v329_v14 = vld [vmem:[#allocation7 + $0x70] sm:$0xff]  ;;  %v454_v18 = vld [vmem:[#allocation7 + $0x458] sm:$0xff] }
 0x11d   :  { %740 = vmatprep.mubr.f32.mxu1 %v1153_v32  ;;  %751 = vmatprep.subr.mxu0 %v370_v33  ;;  %v457_v15 = vld [vmem:[#allocation7 + $0x470] sm:$0xff]  ;;  %v322_v21 = vld [vmem:[#allocation7 + $0x38] sm:$0xff] }
 0x11e   :  { %828 = vmatprep.subr.mxu1 %v498_v35  ;;  %664 = vmatmul.mubr.f32.gmra.mxu0 %v1155_v34  ;;  %v325_v19 = vld [vmem:[#allocation7 + $0x50] sm:$0xff]  ;;  %v450_v25 = vld [vmem:[#allocation7 + $0x438] sm:$0xff] }
 0x11f   :  { %741 = vmatmul.mubr.f32.gmra.mxu1 %v1157_v36  ;;  %752 = vmatpush1.msra.mxu0 %v369_v37  ;;  %v453_v20 = vld [vmem:[#allocation7 + $0x450] sm:$0xff]  ;;  %v318_v30 = vld [vmem:[#allocation7 + $0x18] sm:$0xff] }
 0x120   :  { %829 = vmatpush1.msra.mxu1 %v497_v38  ;;  %753 = vmatprep.subr.mxu0 %v366_v39  ;;  %v321_v28 = vld [vmem:[#allocation7 + $0x30] sm:$0xff]  ;;  %v446_v33 = vld [vmem:[#allocation7 + $0x418] sm:$0xff] }
 0x121   :  { %811 = vmatprep.mubr.f32.mxu0 %v308_v8  ;;  %830 = vmatprep.subr.mxu1 %v494_v40  ;;  %v462_v8 = vld [vmem:[#allocation7 + $0x498] sm:$0xff]  ;;  %v449_v29 = vld [vmem:[#allocation7 + $0x430] sm:$0xff] }
 0x122   :  { %888 = vmatprep.mubr.f32.mxu1 %v310_v12  ;;  %754 = vmatpush1.msra.mxu0 %v365_v41  ;;  %v330_v12 = vld [vmem:[#allocation7 + $0x78] sm:$0xff]  ;;  %v317_v35 = vld [vmem:[#allocation7 + $0x10] sm:$0xff] }
 0x123   :  { %831 = vmatpush1.msra.mxu1 %v493_v42  ;;  %755 = vmatprep.subr.mxu0 %v362_v43  ;;  %v445_v37 = vld [vmem:[#allocation7 + $0x410] sm:$0xff]  ;;  %v442_v38 = vld [vmem:[#allocation7 + $0x3f8] sm:$0xff] }
 0x124   :  { %832 = vmatprep.subr.mxu1 %v490_v44  ;;  %756 = vmatpush1.msra.mxu0 %v361_v45  ;;  %v570_v39 = vld [vmem:[#allocation7 + $0x7f8] sm:$0xff]  ;;  %v441_v40 = vld [vmem:[#allocation7 + $0x3f0] sm:$0xff] }
 0x125   :  { %833 = vmatpush1.msra.mxu1 %v489_v46  ;;  %757 = vmatprep.subr.mxu0 %v358_v47  ;;  %v569_v41 = vld [vmem:[#allocation7 + $0x7f0] sm:$0xff]  ;;  %v438_v42 = vld [vmem:[#allocation7 + $0x3d8] sm:$0xff] }
 0x126   :  { %834 = vmatprep.subr.mxu1 %v486_v48  ;;  %758 = vmatpush1.msra.mxu0 %v357_v49  ;;  %v566_v43 = vld [vmem:[#allocation7 + $0x7d8] sm:$0xff]  ;;  %v437_v44 = vld [vmem:[#allocation7 + $0x3d0] sm:$0xff] }
 0x127   :  { %835 = vmatpush1.msra.mxu1 %v485_v50  ;;  %759 = vmatprep.subr.mxu0 %v354_v51  ;;  %v565_v45 = vld [vmem:[#allocation7 + $0x7d0] sm:$0xff]  ;;  %v434_v46 = vld [vmem:[#allocation7 + $0x3b8] sm:$0xff] }
 0x128   :  { %836 = vmatprep.subr.mxu1 %v482_v52  ;;  %760 = vmatpush1.msra.mxu0 %v353_v53  ;;  %v562_v47 = vld [vmem:[#allocation7 + $0x7b8] sm:$0xff]  ;;  %v433_v48 = vld [vmem:[#allocation7 + $0x3b0] sm:$0xff] }
 0x129   :  { %837 = vmatpush1.msra.mxu1 %v481_v54  ;;  %761 = vmatprep.subr.mxu0 %v350_v55  ;;  %v561_v49 = vld [vmem:[#allocation7 + $0x7b0] sm:$0xff]  ;;  %v430_v50 = vld [vmem:[#allocation7 + $0x398] sm:$0xff] }
 0x12a   :  { %838 = vmatprep.subr.mxu1 %v478_v56  ;;  %762 = vmatpush1.msra.mxu0 %v349_v57  ;;  %v558_v51 = vld [vmem:[#allocation7 + $0x798] sm:$0xff]  ;;  %v429_v52 = vld [vmem:[#allocation7 + $0x390] sm:$0xff] }
 0x12b   :  { %839 = vmatpush1.msra.mxu1 %v477_v58  ;;  %763 = vmatprep.subr.mxu0 %v346_v59  ;;  %v557_v53 = vld [vmem:[#allocation7 + $0x790] sm:$0xff]  ;;  %v426_v54 = vld [vmem:[#allocation7 + $0x378] sm:$0xff] }
 0x12c   :  { %840 = vmatprep.subr.mxu1 %v474_v60  ;;  %764 = vmatpush1.msra.mxu0 %v345_v61  ;;  %v554_v55 = vld [vmem:[#allocation7 + $0x778] sm:$0xff]  ;;  %v425_v56 = vld [vmem:[#allocation7 + $0x370] sm:$0xff] }
 0x12d   :  { %841 = vmatpush1.msra.mxu1 %v473_v62  ;;  %765 = vmatprep.subr.mxu0 %v342_v63  ;;  %v553_v57 = vld [vmem:[#allocation7 + $0x770] sm:$0xff]  ;;  %v422_v58 = vld [vmem:[#allocation7 + $0x358] sm:$0xff] }
 0x12e   :  { %842 = vmatprep.subr.mxu1 %v470_v0  ;;  %766 = vmatpush1.msra.mxu0 %v341_v1  ;;  %v550_v59 = vld [vmem:[#allocation7 + $0x758] sm:$0xff]  ;;  %v421_v60 = vld [vmem:[#allocation7 + $0x350] sm:$0xff] }
 0x12f   :  { %843 = vmatpush1.msra.mxu1 %v469_v2  ;;  %767 = vmatprep.subr.mxu0 %v338_v3  ;;  %v549_v61 = vld [vmem:[#allocation7 + $0x750] sm:$0xff]  ;;  %v418_v62 = vld [vmem:[#allocation7 + $0x338] sm:$0xff] }
 0x130   :  { %844 = vmatprep.subr.mxu1 %v466_v4  ;;  %768 = vmatpush1.msra.mxu0 %v337_v5  ;;  %v546_v63 = vld [vmem:[#allocation7 + $0x738] sm:$0xff]  ;;  %v417_v0 = vld [vmem:[#allocation7 + $0x330] sm:$0xff] }
 0x131   :  { %845 = vmatpush1.msra.mxu1 %v465_v6  ;;  %769 = vmatprep.subr.mxu0 %v334_v7  ;;  %v545_v1 = vld [vmem:[#allocation7 + $0x730] sm:$0xff]  ;;  %v414_v2 = vld [vmem:[#allocation7 + $0x318] sm:$0xff] }
 0x132   :  { %846 = vmatprep.subr.mxu1 %v462_v8  ;;  %770 = vmatpush1.msra.mxu0 %v333_v9  ;;  %v542_v3 = vld [vmem:[#allocation7 + $0x718] sm:$0xff]  ;;  %v413_v4 = vld [vmem:[#allocation7 + $0x310] sm:$0xff] }
 0x133   :  { %847 = vmatpush1.msra.mxu1 %v461_v11  ;;  %771 = vmatprep.subr.mxu0 %v330_v12  ;;  %v541_v5 = vld [vmem:[#allocation7 + $0x710] sm:$0xff]  ;;  %v410_v6 = vld [vmem:[#allocation7 + $0x2f8] sm:$0xff] }
 0x134   :  { %848 = vmatprep.subr.mxu1 %v458_v13  ;;  %772 = vmatpush1.msra.mxu0 %v329_v14  ;;  %v538_v7 = vld [vmem:[#allocation7 + $0x6f8] sm:$0xff]  ;;  %v409_v8 = vld [vmem:[#allocation7 + $0x2f0] sm:$0xff] }
 0x135   :  { %849 = vmatpush1.msra.mxu1 %v457_v15  ;;  %773 = vmatprep.subr.mxu0 %v326_v17  ;;  %v537_v9 = vld [vmem:[#allocation7 + $0x6f0] sm:$0xff]  ;;  %v406_v11 = vld [vmem:[#allocation7 + $0x2d8] sm:$0xff] }
 0x136   :  { %850 = vmatprep.subr.mxu1 %v454_v18  ;;  %774 = vmatpush1.msra.mxu0 %v325_v19  ;;  %v534_v12 = vld [vmem:[#allocation7 + $0x6d8] sm:$0xff]  ;;  %v405_v13 = vld [vmem:[#allocation7 + $0x2d0] sm:$0xff] }
 0x137   :  { %851 = vmatpush1.msra.mxu1 %v453_v20  ;;  %775 = vmatprep.subr.mxu0 %v322_v21  ;;  %v533_v14 = vld [vmem:[#allocation7 + $0x6d0] sm:$0xff]  ;;  %v402_v15 = vld [vmem:[#allocation7 + $0x2b8] sm:$0xff] }
 0x138   :  { %852 = vmatprep.subr.mxu1 %v450_v25  ;;  %776 = vmatpush1.msra.mxu0 %v321_v28  ;;  %v530_v17 = vld [vmem:[#allocation7 + $0x6b8] sm:$0xff]  ;;  %v401_v18 = vld [vmem:[#allocation7 + $0x2b0] sm:$0xff] }
 0x139   :  { %853 = vmatpush1.msra.mxu1 %v449_v29  ;;  %777 = vmatprep.subr.mxu0 %v318_v30  ;;  %v529_v19 = vld [vmem:[#allocation7 + $0x6b0] sm:$0xff]  ;;  %v398_v20 = vld [vmem:[#allocation7 + $0x298] sm:$0xff] }
 0x13a   :  { %854 = vmatprep.subr.mxu1 %v446_v33  ;;  %778 = vmatpush1.msra.mxu0 %v317_v35  ;;  %v526_v21 = vld [vmem:[#allocation7 + $0x698] sm:$0xff]  ;;  %v397_v25 = vld [vmem:[#allocation7 + $0x290] sm:$0xff] }
 0x13b   :  { %855 = vmatpush1.msra.mxu1 %v445_v37  ;;  %779 = vmatprep.subr.mxu0 %v442_v38  ;;  %v525_v28 = vld [vmem:[#allocation7 + $0x690] sm:$0xff]  ;;  %v394_v29 = vld [vmem:[#allocation7 + $0x278] sm:$0xff] }
 0x13c   :  { %856 = vmatprep.subr.mxu1 %v570_v39  ;;  %780 = vmatpush2.msra.mxu0 %v441_v40  ;;  %v522_v30 = vld [vmem:[#allocation7 + $0x678] sm:$0xff]  ;;  %v393_v33 = vld [vmem:[#allocation7 + $0x270] sm:$0xff] }
 0x13d   :  { %857 = vmatpush2.msra.mxu1 %v569_v41  ;;  %781 = vmatprep.subr.mxu0 %v438_v42  ;;  %v521_v35 = vld [vmem:[#allocation7 + $0x670] sm:$0xff]  ;;  %v390_v37 = vld [vmem:[#allocation7 + $0x258] sm:$0xff] }
 0x13e   :  { %858 = vmatprep.subr.mxu1 %v566_v43  ;;  %782 = vmatpush2.msra.mxu0 %v437_v44  ;;  %v518_v38 = vld [vmem:[#allocation7 + $0x658] sm:$0xff]  ;;  %v389_v39 = vld [vmem:[#allocation7 + $0x250] sm:$0xff] }
 0x13f   :  { %859 = vmatpush2.msra.mxu1 %v565_v45  ;;  %783 = vmatprep.subr.mxu0 %v434_v46  ;;  %v517_v40 = vld [vmem:[#allocation7 + $0x650] sm:$0xff]  ;;  %v386_v41 = vld [vmem:[#allocation7 + $0x238] sm:$0xff] }
 0x140   :  { %860 = vmatprep.subr.mxu1 %v562_v47  ;;  %784 = vmatpush2.msra.mxu0 %v433_v48  ;;  %v514_v42 = vld [vmem:[#allocation7 + $0x638] sm:$0xff]  ;;  %v385_v43 = vld [vmem:[#allocation7 + $0x230] sm:$0xff] }
 0x141   :  { %861 = vmatpush2.msra.mxu1 %v561_v49  ;;  %785 = vmatprep.subr.mxu0 %v430_v50  ;;  %v513_v44 = vld [vmem:[#allocation7 + $0x630] sm:$0xff]  ;;  %v382_v45 = vld [vmem:[#allocation7 + $0x218] sm:$0xff]  ;;  %v571_v49 = vld [vmem:[#allocation8] sm:$0xf] }
 0x142   :  { %862 = vmatprep.subr.mxu1 %v558_v51  ;;  %786 = vmatpush2.msra.mxu0 %v429_v52  ;;  %v510_v46 = vld [vmem:[#allocation7 + $0x618] sm:$0xff]  ;;  %v381_v47 = vld [vmem:[#allocation7 + $0x210] sm:$0xff]  ;;  %v576_v50 = vrot.slane %v571_v49, %v96_v23  ;;  %v580_v51 = vrot.slane %v571_v49, %v100_v26  ;;  %v584_v26 = vrot.slane %v571_v49, %v104_v24 }
 0x143   :  { %863 = vmatpush2.msra.mxu1 %v557_v53  ;;  %787 = vmatprep.subr.mxu0 %v426_v54  ;;  %v509_v48 = vld [vmem:[#allocation7 + $0x610] sm:$0xff] }
 0x144   :  { %864 = vmatprep.subr.mxu1 %v554_v55  ;;  %788 = vmatpush2.msra.mxu0 %v425_v56 }
 0x145   :  { %865 = vmatpush2.msra.mxu1 %v553_v57  ;;  %789 = vmatprep.subr.mxu0 %v422_v58 }
 0x146   :  { %866 = vmatprep.subr.mxu1 %v550_v59  ;;  %790 = vmatpush2.msra.mxu0 %v421_v60 }
 0x147   :  { %867 = vmatpush2.msra.mxu1 %v549_v61  ;;  %791 = vmatprep.subr.mxu0 %v418_v62  ;;  %v588_v61 = vrot.slane %v571_v49, %v108_v27 }
 0x148   :  { %868 = vmatprep.subr.mxu1 %v546_v63  ;;  %792 = vmatpush2.msra.mxu0 %v417_v0 }
 0x149   :  { %869 = vmatpush2.msra.mxu1 %v545_v1  ;;  %793 = vmatprep.subr.mxu0 %v414_v2 }
 0x14a   :  { %870 = vmatprep.subr.mxu1 %v542_v3  ;;  %794 = vmatpush2.msra.mxu0 %v413_v4 }
 0x14b   :  { %871 = vmatpush2.msra.mxu1 %v541_v5  ;;  %795 = vmatprep.subr.mxu0 %v410_v6 }
 0x14c   :  { %872 = vmatprep.subr.mxu1 %v538_v7  ;;  %796 = vmatpush2.msra.mxu0 %v409_v8 }
 0x14d   :  { %873 = vmatpush2.msra.mxu1 %v537_v9  ;;  %797 = vmatprep.subr.mxu0 %v406_v11 }
 0x14e   :  { %874 = vmatprep.subr.mxu1 %v534_v12  ;;  %798 = vmatpush2.msra.mxu0 %v405_v13 }
 0x14f   :  { %875 = vmatpush2.msra.mxu1 %v533_v14  ;;  %799 = vmatprep.subr.mxu0 %v402_v15 }
 0x150   :  { %876 = vmatprep.subr.mxu1 %v530_v17  ;;  %800 = vmatpush2.msra.mxu0 %v401_v18 }
 0x151   :  { %877 = vmatpush2.msra.mxu1 %v529_v19  ;;  %801 = vmatprep.subr.mxu0 %v398_v20 }
 0x152   :  { %878 = vmatprep.subr.mxu1 %v526_v21  ;;  %802 = vmatpush2.msra.mxu0 %v397_v25 }
 0x153   :  { %879 = vmatpush2.msra.mxu1 %v525_v28  ;;  %803 = vmatprep.subr.mxu0 %v394_v29 }
 0x154   :  { %880 = vmatprep.subr.mxu1 %v522_v30  ;;  %804 = vmatpush2.msra.mxu0 %v393_v33 }
 0x155   :  { %881 = vmatpush2.msra.mxu1 %v521_v35  ;;  %805 = vmatprep.subr.mxu0 %v390_v37 }
 0x156   :  { %882 = vmatprep.subr.mxu1 %v518_v38  ;;  %806 = vmatpush2.msra.mxu0 %v389_v39 }
 0x157   :  { %883 = vmatpush2.msra.mxu1 %v517_v40  ;;  %807 = vmatprep.subr.mxu0 %v386_v41 }
 0x158   :  { %884 = vmatprep.subr.mxu1 %v514_v42  ;;  %808 = vmatpush2.msra.mxu0 %v385_v43 }
 0x159   :  { %885 = vmatpush2.msra.mxu1 %v513_v44  ;;  %809 = vmatprep.subr.mxu0 %v382_v45 }
 0x15a   :  { %886 = vmatprep.subr.mxu1 %v510_v46  ;;  %810 = vmatpush2.msra.mxu0 %v381_v47 }
 0x15b   :  { %887 = vmatpush2.msra.mxu1 %v509_v48  ;;  %812 = vmatmul.mubr.f32.vlgmr.msra.gmra.mxu0 %v1145_v10 }
 0x15c   :  { %889 = vmatmul.mubr.f32.vlgmr.msra.gmra.mxu1 %v1147_v16  ;;  %817 = vmatprep.mubr.f32.mxu0 %v1151_v31 }
 0x15d   :  { %894 = vmatprep.mubr.f32.mxu1 %v1153_v32 }
 0x15f   :  { %818 = vmatmul.mubr.f32.gmra.mxu0 %v1155_v34 }
 0x160   :  { %895 = vmatmul.mubr.f32.gmra.mxu1 %v1157_v36 }
 0x1d8   :  { %v659_v52 = vpop.f32.mrf.mxu0 }
 0x1d9   :  { %v660_v53 = vadd.f32 %v659_v52, %v576_v50  ;;  %v736_v10 = vpop.f32.mrf.mxu1 }
 0x1da   :  { %v661_v54 = vpop.f32.mrf.mxu0 }
 0x1db   :  { %v737_v16 = vadd.f32 %v736_v10, %v660_v53  ;;  %v662_v55 = vadd.f32 %v661_v54, %v580_v51  ;;  %v738_v31 = vpop.f32.mrf.mxu1 }
 0x1dd   :  { %901 = vst [vmem:[#allocation10] sm:$0xff] %v737_v16  ;;  %v739_v32 = vadd.f32 %v738_v31, %v662_v55 }
 0x1de   :  { %v665_v56 = vpop.f32.mrf.mxu0 }
 0x1df   :  { %902 = vst [vmem:[#allocation10 + $0x8] sm:$0xff] %v739_v32  ;;  %v666_v34 = vadd.f32 %v665_v56, %v576_v50  ;;  %v742_v36 = vpop.f32.mrf.mxu1 }
 0x1e0   :  { %v667_v57 = vpop.f32.mrf.mxu0 }
 0x1e1   :  { %v668_v58 = vadd.f32 %v667_v57, %v580_v51  ;;  %v743_v59 = vadd.f32 %v742_v36, %v666_v34  ;;  %v744_v23 = vpop.f32.mrf.mxu1 }
 0x1e3   :  { %905 = vst [vmem:[#allocation10 + $0x20] sm:$0xff] %v743_v59  ;;  %v745_v60 = vadd.f32 %v744_v23, %v668_v58 }
 0x1e5   :  { %906 = vst [vmem:[#allocation10 + $0x28] sm:$0xff] %v745_v60 }
 0x21b   :  { %v813_v62 = vpop.f32.mrf.mxu0 }
 0x21c   :  { %v814_v63 = vadd.f32 %v813_v62, %v584_v26  ;;  %v890_v0 = vpop.f32.mrf.mxu1 }
 0x21d   :  { %v815_v1 = vpop.f32.mrf.mxu0 }
 0x21e   :  { %v891_v2 = vadd.f32 %v890_v0, %v814_v63  ;;  %v816_v3 = vadd.f32 %v815_v1, %v588_v61  ;;  %v892_v4 = vpop.f32.mrf.mxu1 }
 0x21f   :  { %v819_v5 = vpop.f32.mrf.mxu0 }
 0x220   :  { %903 = vst [vmem:[#allocation10 + $0x10] sm:$0xff] %v891_v2  ;;  %v893_v6 = vadd.f32 %v892_v4, %v816_v3  ;;  %v820_v7 = vadd.f32 %v819_v5, %v584_v26  ;;  %v896_v8 = vpop.f32.mrf.mxu1 }
 0x221   :  { %v821_v9 = vpop.f32.mrf.mxu0 }
 0x222   :  { %904 = vst [vmem:[#allocation10 + $0x18] sm:$0xff] %v893_v6  ;;  %v897_v24 = vadd.f32 %v896_v8, %v820_v7  ;;  %v822_v11 = vadd.f32 %v821_v9, %v588_v61  ;;  %v898_v22 = vpop.f32.mrf.mxu1 }
 0x224   :  { %907 = vst [vmem:[#allocation10 + $0x30] sm:$0xff] %v897_v24  ;;  %v899_v27 = vadd.f32 %v898_v22, %v822_v11 }
 0x226   :  { %908 = vst [vmem:[#allocation10 + $0x38] sm:$0xff] %v899_v27 }
 0x227   :  { %1049 = shalt.err (!%p1046_p10)
}
 0x228   :  { %920 = dma.vmem_to_hbm [thread:$0]  %s915_s15, 1024, %s1188_s5, [#allocation4], %s1067_s21, %s1067_s21, %s1068_s22  }
 0x229   :  { %1064 = dma.done.wait [#allocation4], 1024  }
 0x22a   :  { %1065 = vsyncadd [#allocation4], 4294966272 }
 0x22b   :  { %924 = vsyncpa [#allocation3], 1 }
 0x22c   :  { %925 = vsyncpa [#allocation6], 1 }
 0x22d   :  { %926 = vsyncpa [#allocation9], 1 }
 0x22e   :  { %927 = vsyncpa [#allocation4], 1 }

</bundles_post_ra>
